<compile_context>
chip_gen: v5e
topology: v5e:2x2
jax: 0.10.0
libtpu: 0.0.40
codegen_flags: <defaults>
</compile_context>

<pallas_src>
import functools

import jax
import jax.numpy as jnp
from jax.experimental import pallas as pl
from jax.experimental.pallas import tpu as pltpu

EPS = 1e-5  # nn.BatchNorm2d default eps


def _silu(x):
    return x * jax.nn.sigmoid(x)


def _leaky01(x):
    return jnp.where(x >= 0, x, 0.1 * x)


def fold_bn(bn):
    """Fold eval-mode BatchNorm into per-channel (scale, bias)."""
    s = bn["g"] / jnp.sqrt(bn["v"] + EPS)
    return s, bn["b"] - bn["m"] * s


def _pick_m_tile(M, target):
    """Largest power-of-two-ish row tile <= target that divides M (fallback M)."""
    if M <= target:
        return M
    for cand in (1024, 512, 256, 128, 64, 32, 16, 8):
        if cand <= target and M % cand == 0:
            return cand
    return M  # degenerate fallback: single block


# ---------------------------------------------------------------------------
# Kernel 1: fused 1x1 conv (channel matmul) + folded-BN affine + SiLU
#            M-tiled grid, weights/scale/bias VMEM-resident (constant index map)
# ---------------------------------------------------------------------------
def _pw_kernel(x_ref, w_ref, s_ref, b_ref, o_ref):
    y = jnp.dot(x_ref[...], w_ref[...], preferred_element_type=jnp.float32)
    y = _silu(y * s_ref[...] + b_ref[...])
    o_ref[...] = y.astype(o_ref.dtype)


def pw_conv_bn_silu(x2d, w, scale, bias, m_block=512):
    M, cin = x2d.shape
    cout = w.shape[1]
    tm = _pick_m_tile(M, m_block)
    return pl.pallas_call(
        _pw_kernel,
        grid=(M // tm,),
        in_specs=[
            pl.BlockSpec((tm, cin), lambda i: (i, 0)),
            pl.BlockSpec((cin, cout), lambda i: (0, 0)),
            pl.BlockSpec((1, cout), lambda i: (0, 0)),
            pl.BlockSpec((1, cout), lambda i: (0, 0)),
        ],
        out_specs=pl.BlockSpec((tm, cout), lambda i: (i, 0)),
        out_shape=jax.ShapeDtypeStruct((M, cout), jnp.float32),
        compiler_params=pltpu.CompilerParams(dimension_semantics=("parallel",)),
        cost_estimate=pl.CostEstimate(
            flops=2 * M * cin * cout,
            transcendentals=M * cout,
            bytes_accessed=4 * (M * cin + M * cout + cin * cout + 2 * cout)),
    )(x2d, w, scale.reshape(1, cout), bias.reshape(1, cout))


# ---------------------------------------------------------------------------
# Kernel 2: fused Bottleneck block
#   u = SiLU(BN(1x1(t)))  [stays in VMEM]
#   y = t + SiLU(BN(3x3(u)))   3x3 done as im2col matmul per row chunk,
#   halo padding built in a VMEM scratch (no HBM pad / no u round trip).
# ---------------------------------------------------------------------------
def _bottleneck_kernel(t_ref, w1_ref, s1_ref, b1_ref, w9_ref, s2_ref, b2_ref,
                       o_ref, up_ref, *, H, W, C, TH):
    t3 = t_ref[0]                                           # (H, W, C)

    # 1x1 conv + BN + SiLU
    u = jnp.dot(t3.reshape(H * W, C), w1_ref[...],
                preferred_element_type=jnp.float32)
    u = _silu(u * s1_ref[...] + b1_ref[...])

    # Write u into the interior of a zero-padded VMEM scratch (spatial halo).
    up_ref[...] = jnp.zeros_like(up_ref)
    up_ref[1:H + 1, 1:W + 1, :] = u.reshape(H, W, C).astype(up_ref.dtype)

    # 3x3 conv (pad=1) as one (rows*W, 9*C) @ (9*C, C) matmul per row chunk,
    # followed by BN + SiLU + residual add and a direct store of that chunk.
    for r0 in range(0, H, TH):
        th = min(TH, H - r0)
        cols = [
            up_ref[r0 + kh:r0 + kh + th, kw:kw + W, :].reshape(th * W, C)
            for kh in range(3) for kw in range(3)
        ]
        patches = jnp.concatenate(cols, axis=-1)            # (th*W, 9*C)
        acc = jnp.dot(patches, w9_ref[...],
                      preferred_element_type=jnp.float32)   # (th*W, C)
        y = _silu(acc * s2_ref[...] + b2_ref[...]).reshape(th, W, C)
        o_ref[0, r0:r0 + th, :, :] = (y + t3[r0:r0 + th, :, :]).astype(o_ref.dtype)


def bottleneck_block(t, w1, s1, b1, w9, s2, b2, row_block=8):
    N, H, W, C = t.shape
    TH = min(row_block, H)
    kernel = functools.partial(_bottleneck_kernel, H=H, W=W, C=C, TH=TH)
    flops = 2 * N * H * W * (C * C + 9 * C * C)
    return pl.pallas_call(
        kernel,
        grid=(N,),
        in_specs=[
            pl.BlockSpec((1, H, W, C), lambda n: (n, 0, 0, 0)),
            pl.BlockSpec((C, C), lambda n: (0, 0)),
            pl.BlockSpec((1, C), lambda n: (0, 0)),
            pl.BlockSpec((1, C), lambda n: (0, 0)),
            pl.BlockSpec((9 * C, C), lambda n: (0, 0)),
            pl.BlockSpec((1, C), lambda n: (0, 0)),
            pl.BlockSpec((1, C), lambda n: (0, 0)),
        ],
        out_specs=pl.BlockSpec((1, H, W, C), lambda n: (n, 0, 0, 0)),
        out_shape=jax.ShapeDtypeStruct((N, H, W, C), jnp.float32),
        scratch_shapes=[pltpu.VMEM((H + 2, W + 2, C), jnp.float32)],
        compiler_params=pltpu.CompilerParams(dimension_semantics=("parallel",)),
        cost_estimate=pl.CostEstimate(
            flops=flops,
            transcendentals=2 * N * H * W * C,
            bytes_accessed=4 * (2 * N * H * W * C + 10 * C * C + 4 * C)),
    )(t, w1, s1.reshape(1, C), b1.reshape(1, C),
      w9, s2.reshape(1, C), b2.reshape(1, C))


# ---------------------------------------------------------------------------
# Kernel 3: fused CSP tail
#   z1 = leaky(BN_top(t @ w3)); z2 = leaky(BN_bot(x @ w2))
#   out = SiLU(BN4(z1 @ w4_top + z2 @ w4_bot))      (== cv4(act(bn(cat(y1,y2)))))
# ---------------------------------------------------------------------------
def _csp_tail_kernel(t_ref, x_ref, w3_ref, sb1_ref, bb1_ref,
                     w2_ref, sb2_ref, bb2_ref,
                     w4t_ref, w4b_ref, s4_ref, b4_ref, o_ref):
    y1 = jnp.dot(t_ref[...], w3_ref[...], preferred_element_type=jnp.float32)
    z1 = _leaky01(y1 * sb1_ref[...] + bb1_ref[...])
    y2 = jnp.dot(x_ref[...], w2_ref[...], preferred_element_type=jnp.float32)
    z2 = _leaky01(y2 * sb2_ref[...] + bb2_ref[...])
    z = (jnp.dot(z1, w4t_ref[...], preferred_element_type=jnp.float32)
         + jnp.dot(z2, w4b_ref[...], preferred_element_type=jnp.float32))
    o_ref[...] = _silu(z * s4_ref[...] + b4_ref[...]).astype(o_ref.dtype)


def csp_tail(t2d, x2d, w3, sbn, bbn, w2, w4, s4, b4, m_block=512):
    M, c_ = t2d.shape
    c1 = x2d.shape[1]
    c2 = w4.shape[1]
    tm = _pick_m_tile(M, m_block)
    const = lambda i: (0, 0)
    flops = 2 * M * (c_ * c_ + c1 * c_ + 2 * c_ * c2)
    return pl.pallas_call(
        _csp_tail_kernel,
        grid=(M // tm,),
        in_specs=[
            pl.BlockSpec((tm, c_), lambda i: (i, 0)),
            pl.BlockSpec((tm, c1), lambda i: (i, 0)),
            pl.BlockSpec((c_, c_), const),
            pl.BlockSpec((1, c_), const),
            pl.BlockSpec((1, c_), const),
            pl.BlockSpec((c1, c_), const),
            pl.BlockSpec((1, c_), const),
            pl.BlockSpec((1, c_), const),
            pl.BlockSpec((c_, c2), const),
            pl.BlockSpec((c_, c2), const),
            pl.BlockSpec((1, c2), const),
            pl.BlockSpec((1, c2), const),
        ],
        out_specs=pl.BlockSpec((tm, c2), lambda i: (i, 0)),
        out_shape=jax.ShapeDtypeStruct((M, c2), jnp.float32),
        compiler_params=pltpu.CompilerParams(dimension_semantics=("parallel",)),
        cost_estimate=pl.CostEstimate(
            flops=flops,
            transcendentals=M * c2,
            bytes_accessed=4 * M * (c_ + c1 + c2)),
    )(t2d, x2d, w3,
      sbn[:c_].reshape(1, c_), bbn[:c_].reshape(1, c_),
      w2, sbn[c_:].reshape(1, c_), bbn[c_:].reshape(1, c_),
      w4[:c_], w4[c_:], s4.reshape(1, c2), b4.reshape(1, c2))


# ---------------------------------------------------------------------------
# Parameters (deterministic synthetic init matching the module's shapes)
# ---------------------------------------------------------------------------
def init_params(key, c1, c2, n=1, e=0.5):
    c_ = int(c2 * e)
    keys = iter(jax.random.split(key, 128))

    def wpw(cin, cout):  # 1x1 conv weight, stored (Cin, Cout)
        return jax.random.normal(next(keys), (cin, cout), jnp.float32) * 0.2

    def w33(cin, cout):  # 3x3 conv weight, stored HWIO
        return jax.random.normal(next(keys), (3, 3, cin, cout), jnp.float32) * 0.2

    def bnp(c):
        return dict(
            g=jax.random.uniform(next(keys), (c,), jnp.float32, 0.5, 1.5),
            b=jax.random.normal(next(keys), (c,), jnp.float32) * 0.1,
            m=jax.random.normal(next(keys), (c,), jnp.float32) * 0.1,
            v=jax.random.uniform(next(keys), (c,), jnp.float32, 0.5, 1.5),
        )

    return dict(
        cv1=dict(w=wpw(c1, c_), bn=bnp(c_)),
        cv2_w=wpw(c1, c_),                       # plain Conv2d, no bias/BN/act
        cv3_w=wpw(c_, c_),                       # plain Conv2d, no bias/BN/act
        cv4=dict(w=wpw(2 * c_, c2), bn=bnp(c2)),
        bn=bnp(2 * c_),
        m=[dict(cv1=dict(w=wpw(c_, c_), bn=bnp(c_)),
                cv2=dict(w=w33(c_, c_), bn=bnp(c_))) for _ in range(n)],
    )


# ---------------------------------------------------------------------------
# Pallas forward (takes NCHW like the PyTorch module)
# ---------------------------------------------------------------------------
def bottleneck_csp_pallas(x_nchw, p, m_block=512, row_block=8):
    x = jnp.transpose(x_nchw, (0, 2, 3, 1)).astype(jnp.float32)  # NHWC
    N, H, W, c1 = x.shape
    c_ = p["cv1"]["w"].shape[1]
    c2 = p["cv4"]["w"].shape[1]
    M = N * H * W
    x2d = x.reshape(M, c1)

    # cv1: 1x1 conv + BN + SiLU (M-tiled)
    s1, b1 = fold_bn(p["cv1"]["bn"])
    t = pw_conv_bn_silu(x2d, p["cv1"]["w"], s1, b1, m_block).reshape(N, H, W, c_)

    # m: sequence of fused Bottleneck blocks (shortcut active: c_ == c_)
    for blk in p["m"]:
        sb1, bb1 = fold_bn(blk["cv1"]["bn"])
        sb2, bb2 = fold_bn(blk["cv2"]["bn"])
        w9 = blk["cv2"]["w"].reshape(9 * c_, c_)   # (kh,kw,Cin) flattened, im2col order
        t = bottleneck_block(t, blk["cv1"]["w"], sb1, bb1, w9, sb2, bb2, row_block)

    # fused tail: cv3(t), cv2(x), BN(concat)+LeakyReLU, cv4+BN+SiLU
    sbn, bbn = fold_bn(p["bn"])
    s4, b4 = fold_bn(p["cv4"]["bn"])
    out = csp_tail(t.reshape(M, c_), x2d, p["cv3_w"], sbn, bbn,
                   p["cv2_w"], p["cv4"]["w"], s4, b4, m_block)
    return jnp.transpose(out.reshape(N, H, W, c2), (0, 3, 1, 2))   # back to NCHW


# ---------------------------------------------------------------------------
# Pure-JAX reference (mirrors the PyTorch forward, eval-mode BN)
# ---------------------------------------------------------------------------
def ref_forward(x_nchw, p):
    x = jnp.transpose(x_nchw, (0, 2, 3, 1)).astype(jnp.float32)

    def bn_apply(y, bn):
        return (y - bn["m"]) / jnp.sqrt(bn["v"] + EPS) * bn["g"] + bn["b"]

    def conv1x1(y, w):
        return jnp.einsum("nhwc,co->nhwo", y, w, precision="highest")

    def conv3x3(y, w):
        return jax.lax.conv_general_dilated(
            y, w, (1, 1), ((1, 1), (1, 1)),
            dimension_numbers=("NHWC", "HWIO", "NHWC"), precision="highest")

    t = _silu(bn_apply(conv1x1(x, p["cv1"]["w"]), p["cv1"]["bn"]))
    for blk in p["m"]:
        u = _silu(bn_apply(conv1x1(t, blk["cv1"]["w"]), blk["cv1"]["bn"]))
        t = t + _silu(bn_apply(conv3x3(u, blk["cv2"]["w"]), blk["cv2"]["bn"]))
    y1 = conv1x1(t, p["cv3_w"])
    y2 = conv1x1(x, p["cv2_w"])
    cat = jnp.concatenate([y1, y2], axis=-1)
    z = _leaky01(bn_apply(cat, p["bn"]))
    out = _silu(bn_apply(conv1x1(z, p["cv4"]["w"]), p["cv4"]["bn"]))
    return jnp.transpose(out, (0, 3, 1, 2))


if __name__ == "__main__":
    key = jax.random.PRNGKey(0)
    kp, kx = jax.random.split(key)

    c1 = c2 = 8           # -> c_ = 4
    n_blocks = 2
    params = init_params(kp, c1, c2, n=n_blocks, e=0.5)
    x = jax.random.normal(kx, (2, c1, 16, 16), jnp.float32)   # NCHW input

    # m_block=128 so the M-tiled grids actually take multiple steps (M=512 -> 4)
    out = jax.block_until_ready(
        bottleneck_csp_pallas(x, params, m_block=128, row_block=8))
    ref = jax.block_until_ready(ref_forward(x, params))

    assert out.shape == ref.shape == (2, c2, 16, 16), (out.shape, ref.shape)
    max_err = float(jnp.max(jnp.abs(out - ref)))
    assert jnp.allclose(out, ref, atol=2e-2, rtol=2e-2), f"max abs err {max_err}"
    print("KERNEL_OK")
</pallas_src>

<mosaic_0001>
module attributes {stable_mosaic.version = 11 : i64} {
  func.func @_pw_kernel(%arg0: i32, %arg1: memref<128x8xf32, #tpu.memory_space<vmem>>, %arg2: memref<8x4xf32, #tpu.memory_space<vmem>>, %arg3: memref<1x4xf32, #tpu.memory_space<vmem>>, %arg4: memref<1x4xf32, #tpu.memory_space<vmem>>, %arg5: memref<128x4xf32, #tpu.memory_space<vmem>>) attributes {dimension_semantics = [#tpu.dimension_semantics<parallel>], iteration_bounds = array<i64: 4>, scalar_prefetch = 0 : i64, scratch_operands = 0 : i64, tpu.core_type = #tpu.core_type<tc>, window_params = [{transform_indices = @transform_0, window_bounds = array<i64: 128, 8>}, {pipeline_mode = #tpu.pipeline_mode<synchronous>, transform_indices = @transform_1, window_bounds = array<i64: 8, 4>}, {pipeline_mode = #tpu.pipeline_mode<synchronous>, transform_indices = @transform_2, window_bounds = array<i64: 1, 4>}, {pipeline_mode = #tpu.pipeline_mode<synchronous>, transform_indices = @transform_3, window_bounds = array<i64: 1, 4>}, {transform_indices = @transform_4, window_bounds = array<i64: 128, 4>}]} {
    %c0 = arith.constant 0 : index
    %c0_0 = arith.constant 0 : index
    %0 = vector.load %arg1[%c0, %c0_0] : memref<128x8xf32, #tpu.memory_space<vmem>>, vector<128x8xf32>
    %c0_1 = arith.constant 0 : index
    %c0_2 = arith.constant 0 : index
    %1 = vector.load %arg2[%c0_1, %c0_2] : memref<8x4xf32, #tpu.memory_space<vmem>>, vector<8x4xf32>
    %cst = arith.constant dense<0.000000e+00> : vector<128x4xf32>
    %2 = tpu.matmul %0, %1, %cst {dimension_numbers = #tpu.dot_dimension_numbers<[1], [0], [0], [1], [0, 0, 1, 1], [], []>} : vector<128x8xf32>, vector<8x4xf32>, vector<128x4xf32> -> vector<128x4xf32>
    %c0_3 = arith.constant 0 : index
    %c0_4 = arith.constant 0 : index
    %3 = vector.load %arg3[%c0_3, %c0_4] : memref<1x4xf32, #tpu.memory_space<vmem>>, vector<1x4xf32>
    %4 = vector.broadcast %3 : vector<1x4xf32> to vector<128x4xf32>
    %5 = arith.mulf %2, %4 : vector<128x4xf32>
    %c0_5 = arith.constant 0 : index
    %c0_6 = arith.constant 0 : index
    %6 = vector.load %arg4[%c0_5, %c0_6] : memref<1x4xf32, #tpu.memory_space<vmem>>, vector<1x4xf32>
    %7 = vector.broadcast %6 : vector<1x4xf32> to vector<128x4xf32>
    %8 = arith.addf %5, %7 : vector<128x4xf32>
    %9 = arith.negf %8 : vector<128x4xf32>
    %10 = math.exp %9 : vector<128x4xf32>
    %cst_7 = arith.constant 1.000000e+00 : f32
    %11 = vector.broadcast %cst_7 : f32 to vector<128x4xf32>
    %12 = arith.addf %11, %10 : vector<128x4xf32>
    %13 = arith.divf %11, %12 : vector<128x4xf32>
    %14 = arith.mulf %8, %13 : vector<128x4xf32>
    %c0_8 = arith.constant 0 : index
    %c0_9 = arith.constant 0 : index
    %15 = vector.load %arg5[%c0_8, %c0_9] : memref<128x4xf32, #tpu.memory_space<vmem>>, vector<128x4xf32>
    tpu.vector_store %arg5[%c0_8, %c0_9], %14 {strides = array<i32>} : memref<128x4xf32, #tpu.memory_space<vmem>>, vector<128x4xf32>,
    return
  }
  func.func @transform_0(%arg0: i32) -> (i32, i32) {
    %c0_i32 = arith.constant 0 : i32
    %c0_i32_0 = arith.constant 0 : i32
    return %arg0, %c0_i32 : i32, i32
  }
  func.func @transform_1(%arg0: i32) -> (i32, i32) {
    %c0_i32 = arith.constant 0 : i32
    %c0_i32_0 = arith.constant 0 : i32
    %c0_i32_1 = arith.constant 0 : i32
    return %c0_i32, %c0_i32_0 : i32, i32
  }
  func.func @transform_2(%arg0: i32) -> (i32, i32) {
    %c0_i32 = arith.constant 0 : i32
    %c0_i32_0 = arith.constant 0 : i32
    %c0_i32_1 = arith.constant 0 : i32
    return %c0_i32, %c0_i32_0 : i32, i32
  }
  func.func @transform_3(%arg0: i32) -> (i32, i32) {
    %c0_i32 = arith.constant 0 : i32
    %c0_i32_0 = arith.constant 0 : i32
    %c0_i32_1 = arith.constant 0 : i32
    return %c0_i32, %c0_i32_0 : i32, i32
  }
  func.func @transform_4(%arg0: i32) -> (i32, i32) {
    %c0_i32 = arith.constant 0 : i32
    %c0_i32_0 = arith.constant 0 : i32
    return %arg0, %c0_i32 : i32, i32
  }
}

</mosaic_0001>

<bundles_post_ra>
// kernel: tpu_custom_call.1
= control target key start
LH: loop header
LB: loop body
LE: loop exit
PB: predicated region body
PF: predicated region fallthrough
CT: control target
= control target key end

     0   :  { %s918_s15 = smov 0   ;;  %s1270_s0 = inlined_call_operand.vmem [shape: f32[512,8], index: 0, kind: input, shape index: {}]   ;;  %s1271_s1 = inlined_call_operand.vmem [shape: f32[8,4], index: 1, kind: input, shape index: {}]   ;;  %s1272_s2 = inlined_call_operand.vmem [shape: f32[1,4], index: 2, kind: input, shape index: {}]   ;;  %s1273_s3 = inlined_call_operand.vmem [shape: f32[1,4], index: 3, kind: input, shape index: {}]   ;;  %s1274_s4 = inlined_call_operand.vmem [shape: f32[512,4], index: 4, kind: output, shape index: {}]  }
   0x1 LB: > { %s765_s16 = sadd.s32 4294967295, %s891_s15   ;;  %p769_p0 = scmp.ge.s32.totalorder %s891_s15, 1  ;;  %s891_s15 = sphi %s918_s15, %s14_s15  }
   0x2   : > { %p163_p1 = scmp.lt.s32.totalorder %s891_s15, 5 }
   0x4   : > { %p164_p2 = pnand %p769_p0, %p163_p1 }
   0x5   : > { %s770_s19 = sshll.u32 (!%p164_p2), %s765_s16, 4 }
   0x6   : > { %167 = sbr.rel (%p164_p2) target bundleno = 240 (0xf0), region = 36  ;;  %p190_p3 = scmp.lt.s32.totalorder (!%p164_p2), %s770_s19, 63 }
   0xb   : > { %v217_v0 = vld [vmem:[%s1271_s1] sm:$0xff]  ;;  %s1294_s19 = smov (!%p190_p3, %s770_s19), 63  ;;  %vm218_vm0 = vcmask 64512   ;;  %vm692_vm4 = vcmask 31744  }
   0xc   : > { %282 = vmatpush.msra.mxu0 %v217_v0  ;;  %808 = vmatpush.msra.mxu1 %v217_v0  ;;  %s771_s20 = sshll.u32 %s1294_s19, 3  ;;  %v956_v17 = vld [vmem:[%s1272_s2] ss:$0 sm:$0xff] }
   0xd   : > { %809 = vmatpush.msra.mxu2 %v217_v0  ;;  %810 = vmatpush.msra.mxu3 %v217_v0  ;;  %s193_s23 = scalar_lea.vmem %s1270_s0, %s771_s20  ;;  %v961_v18 = vld [vmem:[%s1273_s3] ss:$0 sm:$0xff]  ;;  %s1058_s30 = scalar_lea.vmem %s1274_s4, %s771_s20 }
   0xe   : > { %v201_v1 = vld [vmem:[%s193_s23] sm:$0xff]  ;;  %v202_v5 = vld [vmem:[%s193_s23 + $0x8] sm:$0xff]  ;;  %v203_v9 = vld [vmem:[%s193_s23 + $0x10] sm:$0xff] }
   0xf   : > { %v205_v2 = vld [vmem:[%s193_s23 + $0x20] sm:$0xff]  ;;  %774 = vmatmul.msk.f32.vlgmr.msra.gmra.mxu0 %vm218_vm0, %v201_v1  ;;  %v206_v6 = vld [vmem:[%s193_s23 + $0x28] sm:$0xff]  ;;  %v207_v10 = vld [vmem:[%s193_s23 + $0x30] sm:$0xff] }
  0x10   : > { %v209_v3 = vld [vmem:[%s193_s23 + $0x40] sm:$0xff]  ;;  %778 = vmatmul.msk.f32.vlgmr.msra.gmra.mxu1 %vm218_vm0, %v205_v2  ;;  %v210_v7 = vld [vmem:[%s193_s23 + $0x48] sm:$0xff]  ;;  %v211_v11 = vld [vmem:[%s193_s23 + $0x50] sm:$0xff] }
  0x11   : > { %v213_v4 = vld [vmem:[%s193_s23 + $0x60] sm:$0xff]  ;;  %782 = vmatmul.msk.f32.vlgmr.msra.gmra.mxu2 %vm218_vm0, %v209_v3  ;;  %v214_v8 = vld [vmem:[%s193_s23 + $0x68] sm:$0xff]  ;;  %v215_v12 = vld [vmem:[%s193_s23 + $0x70] sm:$0xff] }
  0x12   : > { %786 = vmatmul.msk.f32.vlgmr.msra.gmra.mxu3 %vm218_vm0, %v213_v4  ;;  %v204_v13 = vld [vmem:[%s193_s23 + $0x18] sm:$0xff] }
  0x13   : > { %v208_v14 = vld [vmem:[%s193_s23 + $0x38] sm:$0xff] }
  0x14   : > { %v212_v15 = vld [vmem:[%s193_s23 + $0x58] sm:$0xff] }
  0x15   : > { %v216_v16 = vld [vmem:[%s193_s23 + $0x78] sm:$0xff] }
  0x17   : > { %775 = vmatmul.msk.f32.gmra.mxu0 %vm218_vm0, %v202_v5 }
  0x18   : > { %779 = vmatmul.msk.f32.gmra.mxu1 %vm218_vm0, %v206_v6 }
  0x19   : > { %783 = vmatmul.msk.f32.gmra.mxu2 %vm218_vm0, %v210_v7 }
  0x1a   : > { %787 = vmatmul.msk.f32.gmra.mxu3 %vm218_vm0, %v214_v8 }
  0x1f   : > { %776 = vmatmul.msk.f32.gmra.mxu0 %vm218_vm0, %v203_v9 }
  0x20   : > { %780 = vmatmul.msk.f32.gmra.mxu1 %vm218_vm0, %v207_v10 }
  0x21   : > { %784 = vmatmul.msk.f32.gmra.mxu2 %vm218_vm0, %v211_v11 }
  0x22   : > { %788 = vmatmul.msk.f32.gmra.mxu3 %vm218_vm0, %v215_v12 }
  0x27   : > { %777 = vmatmul.msk.f32.gmra.mxu0 %vm218_vm0, %v204_v13 }
  0x28   : > { %781 = vmatmul.msk.f32.gmra.mxu1 %vm218_vm0, %v208_v14 }
  0x29   : > { %785 = vmatmul.msk.f32.gmra.mxu2 %vm218_vm0, %v212_v15 }
  0x2a   : > { %789 = vmatmul.msk.f32.gmra.mxu3 %vm218_vm0, %v216_v16 }
  0x8c   : > { %v284_v19 = vpop.f32.mrf.mxu0 }
  0x8d   : > { %v296_v20 = vpop.f32.mrf.mxu1  ;;  %v336_v21 = vmul.f32 %v956_v17, %v284_v19 }
  0x8e   : > { %v340_v22 = vmul.f32 %v956_v17, %v296_v20 }
  0x8f   : > { %v966_v23 = vadd.f32 %v961_v18, %v336_v21 }
  0x90   : > { %v969_v24 = vadd.f32 %v961_v18, %v340_v22 }
  0x91   : > { %v790_v25 = vmul.f32 -1.442695, %v966_v23 }
  0x92   : > { %v794_v26 = vmul.f32 -1.442695, %v969_v24 }
  0x93   : > { %821 = vpow2.f32 %v790_v25 }
  0x94   : > { %v308_v27 = vpop.f32.mrf.mxu2  ;;  %823 = vpow2.f32 %v794_v26  ;;  %v287_v31 = vpop.f32.mrf.mxu0 }
  0x95   : > { %v320_v28 = vpop.f32.mrf.mxu3  ;;  %v344_v29 = vmul.f32 %v956_v17, %v308_v27  ;;  %v299_v32 = vpop.f32.mrf.mxu1  ;;  %v337_v33 = vmul.f32 %v956_v17, %v287_v31 }
  0x96   : > { %v348_v30 = vmul.f32 %v956_v17, %v320_v28  ;;  %v341_v34 = vmul.f32 %v956_v17, %v299_v32 }
  0x97   : > { %v978_v35 = vadd.f32 %v961_v18, %v344_v29  ;;  %v984_v37 = vadd.f32 %v961_v18, %v337_v33 }
  0x98   : > { %v981_v36 = vadd.f32 %v961_v18, %v348_v30  ;;  %v987_v38 = vadd.f32 %v961_v18, %v341_v34 }
  0x99   : > { %v798_v39 = vmul.f32 -1.442695, %v978_v35  ;;  %v822_v41 = vpop.eup %821  ;;  %v791_v44 = vmul.f32 -1.442695, %v984_v37 }
  0x9a   : > { %v802_v40 = vmul.f32 -1.442695, %v981_v36  ;;  %v824_v42 = vpop.eup %823  ;;  %v420_v43 = vadd.f32 1.0, %v822_v41  ;;  %v795_v46 = vmul.f32 -1.442695, %v987_v38 }
  0x9b   : > { %825 = vpow2.f32 %v798_v39  ;;  %v992_v45 = vadd.f32 1.0, %v824_v42 }
  0x9c   : > { %827 = vpow2.f32 %v802_v40  ;;  %v311_v47 = vpop.f32.mrf.mxu2  ;;  %v445_v50 = vand.u32 2147483647, %v420_v43  ;;  %v447_v51 = vand.u32 2147483648, %v420_v43  ;;  %v290_v52 = vpop.f32.mrf.mxu0  ;;  %vm441_vm1 = vweird.f32 %v420_v43 }
  0x9d   : > { %829 = vrcp.f32 %v420_v43  ;;  %v345_v48 = vmul.f32 %v956_v17, %v311_v47  ;;  %v323_v49 = vpop.f32.mrf.mxu3  ;;  %v505_v54 = vand.u32 2147483647, %v992_v45  ;;  %v507_v57 = vand.u32 2147483648, %v992_v45  ;;  %v302_v60 = vpop.f32.mrf.mxu1 }
  0x9e   : > { %831 = vrcp.f32 %v992_v45  ;;  %v349_v59 = vmul.f32 %v956_v17, %v323_v49  ;;  %vm501_vm2 = vweird.f32 %v992_v45  ;;  %v338_v63 = vmul.f32 %v956_v17, %v290_v52 }
  0x9f   : > { %833 = vpow2.f32 %v791_v44  ;;  %v999_v55 = vadd.f32 %v961_v18, %v345_v48  ;;  %vm1009_vm3 = vcmp.eq.f32.partialorder %v445_v50, 8.507059e+37  ;;  %v448_v3 = vor.u32 1.1754944e-38, %v447_v51 }
  0xa0   : > { %835 = vpow2.f32 %v795_v46  ;;  %vm1015_vm5 = vcmp.eq.f32.partialorder %v505_v54, 8.507059e+37  ;;  %v342_v8 = vmul.f32 %v956_v17, %v302_v60  ;;  %v508_v11 = vor.u32 1.1754944e-38, %v507_v57 }
  0xa1   : > { %v826_v53 = vpop.eup %825  ;;  %v799_v7 = vmul.f32 -1.442695, %v999_v55  ;;  %v1023_v12 = vadd.f32 %v961_v18, %v349_v59  ;;  %v1028_v16 = vadd.f32 %v961_v18, %v338_v63 }
  0xa2   : > { %v828_v56 = vpop.eup %827  ;;  %v1002_v58 = vadd.f32 1.0, %v826_v53  ;;  %v1035_v25 = vadd.f32 %v961_v18, %v342_v8 }
  0xa3   : > { %v830_v61 = vpop.eup %829  ;;  %v1006_v62 = vadd.f32 1.0, %v828_v56  ;;  %v803_v40 = vmul.f32 -1.442695, %v1023_v12  ;;  %v792_v63 = vmul.f32 -1.442695, %v1028_v16 }
  0xa4   : > { %v832_v0 = vpop.eup %831  ;;  %v437_v1 = vmul.f32 %v830_v61, %v420_v43  ;;  %837 = vrcp.f32 %v1002_v58  ;;  %v565_v14 = vand.u32 2147483647, %v1002_v58  ;;  %v567_v15 = vand.u32 2147483648, %v1002_v58 }
  0xa5   : > { %v834_v4 = vpop.eup %833  ;;  %v497_v5 = vmul.f32 %v832_v0, %v992_v45  ;;  %839 = vrcp.f32 %v1006_v62  ;;  %vm442_vm6 = vweird.f32 %v830_v61  ;;  %vm502_vm7 = vweird.f32 %v832_v0 }
  0xa6   : > { %v836_v9 = vpop.eup %835  ;;  %v438_v10 = vsub.f32 1.0, %v437_v1  ;;  %v1030_v20 = vadd.f32 1.0, %v834_v4  ;;  %841 = vpow2.f32 %v799_v7  ;;  %vm561_vm8 = vweird.f32 %v1002_v58  ;;  %vm443_vm9 = vmor %vm441_vm1, %vm442_vm6 }
  0xa7   : > { %v498_v13 = vsub.f32 1.0, %v497_v5  ;;  %v1032_v21 = vadd.f32 1.0, %v836_v9  ;;  %v625_v28 = vand.u32 2147483647, %v1006_v62  ;;  %vm1042_vm10 = vcmp.eq.f32.partialorder %v565_v14, 8.507059e+37  ;;  %vm503_vm12 = vmor %vm501_vm2, %vm502_vm7 }
  0xa8   : > { %v439_v19 = vmul.f32 %v830_v61, %v438_v10  ;;  %843 = vrcp.f32 %v1030_v20  ;;  %v568_v32 = vor.u32 1.1754944e-38, %v567_v15  ;;  %vm621_vm11 = vweird.f32 %v1006_v62  ;;  %v314_v10 = vpop.f32.mrf.mxu2 }
  0xa9   : > { %v499_v22 = vmul.f32 %v832_v0, %v498_v13  ;;  %v627_v39 = vand.u32 2147483648, %v1006_v62  ;;  %845 = vrcp.f32 %v1032_v21  ;;  %vm1066_vm13 = vcmp.eq.f32.partialorder %v625_v28, 8.507059e+37 }
  0xaa   : > { %v838_v26 = vpop.eup %837  ;;  %v440_v27 = vadd.f32 %v830_v61, %v439_v19  ;;  %v460_v48 = vand.u32 2147483647, %v1030_v20  ;;  %vm456_vm15 = vweird.f32 %v1030_v20  ;;  %847 = vpow2.f32 %v803_v40  ;;  %v326_v19 = vpop.f32.mrf.mxu3 }
  0xab   : > { %v500_v29 = vadd.f32 %v832_v0, %v499_v22  ;;  %v557_v30 = vmul.f32 %v838_v26, %v1002_v58  ;;  %v840_v33 = vpop.eup %839  ;;  %vm562_vm14 = vweird.f32 %v838_v26  ;;  %v628_v54 = vor.u32 1.1754944e-38, %v627_v39  ;;  %v293_v22 = vpop.f32.mrf.mxu0 }
  0xac   : > { %v444_v34 = vsel %vm443_vm9, %v830_v61, %v440_v27  ;;  %v617_v44 = vmul.f32 %v840_v33, %v1006_v62  ;;  %v842_v49 = vpop.eup %841  ;;  %vm622_vm0 = vweird.f32 %v840_v33  ;;  %vm563_vm1 = vmor %vm561_vm8, %vm562_vm14  ;;  %vm1082_vm2 = vcmp.eq.f32.partialorder %v460_v48, 8.507059e+37 }
  0xad   : > { %v449_v41 = vsel %vm1009_vm3, %v448_v3, %v444_v34  ;;  %v504_v42 = vsel %vm503_vm12, %v832_v0, %v500_v29  ;;  %v558_v43 = vsub.f32 1.0, %v557_v30  ;;  %v462_v61 = vand.u32 2147483648, %v1030_v20  ;;  %vm623_vm3 = vmor %vm621_vm11, %vm622_vm0 }
  0xae   : > { %v676_v45 = vmul.f32 %v449_v41, %v966_v23  ;;  %v509_v46 = vsel %vm1015_vm5, %v508_v11, %v504_v42  ;;  %v618_v52 = vsub.f32 1.0, %v617_v44  ;;  %v844_v53 = vpop.eup %843  ;;  %v1075_v23 = vadd.f32 1.0, %v842_v49  ;;  %v305_v44 = vpop.f32.mrf.mxu1 }
  0xaf   : > { %v680_v50 = vmul.f32 %v509_v46, %v969_v24  ;;  %v559_v51 = vmul.f32 %v838_v26, %v558_v43  ;;  %v452_v59 = vmul.f32 %v844_v53, %v1030_v20  ;;  %v846_v24 = vpop.eup %845  ;;  %vm457_vm5 = vweird.f32 %v844_v53 }
  0xb0   : > { %693 = vst.msk [vmem:[%s1058_s30] sm:$0xff] %vm692_vm4, %v676_v45  ;;  %v619_v57 = vmul.f32 %v840_v33, %v618_v52  ;;  %849 = vrcp.f32 %v1075_v23  ;;  %v512_v3 = vmul.f32 %v846_v24, %v1032_v21  ;;  %v520_v4 = vand.u32 2147483647, %v1032_v21  ;;  %v848_v11 = vpop.eup %847  ;;  %vm458_vm8 = vmor %vm456_vm15, %vm457_vm5 }
  0xb1   : > { %697 = vst.msk [vmem:[%s1058_s30 + $0x20] sm:$0xff] %vm692_vm4, %v680_v50  ;;  %v560_v56 = vadd.f32 %v838_v26, %v559_v51  ;;  %v453_v2 = vsub.f32 1.0, %v452_v59  ;;  %v522_v5 = vand.u32 2147483648, %v1032_v21  ;;  %vm516_vm6 = vweird.f32 %v1032_v21 }
  0xb2   : > { %v620_v1 = vadd.f32 %v840_v33, %v619_v57  ;;  %v513_v9 = vsub.f32 1.0, %v512_v3  ;;  %vm517_vm7 = vweird.f32 %v846_v24  ;;  %851 = vpow2.f32 %v792_v63  ;;  %v329_v63 = vpop.f32.mrf.mxu3  ;;  %v317_v3 = vpop.f32.mrf.mxu2 }
  0xb3   : > { %v564_v0 = vsel %vm563_vm1, %v838_v26, %v560_v56  ;;  %v454_v8 = vmul.f32 %v844_v53, %v453_v2  ;;  %v463_v27 = vor.u32 1.1754944e-38, %v462_v61  ;;  %vm1108_vm9 = vcmp.eq.f32.partialorder %v520_v4, 8.507059e+37 }
  0xb4   : > { %v569_v58 = vsel %vm1042_vm10, %v568_v32, %v564_v0  ;;  %v624_v7 = vsel %vm623_vm3, %v840_v33, %v620_v1  ;;  %v514_v15 = vmul.f32 %v846_v24, %v513_v9  ;;  %v796_v29 = vmul.f32 -1.442695, %v1035_v25  ;;  %vm518_vm10 = vmor %vm516_vm6, %vm517_vm7 }
  0xb5   : > { %v684_v6 = vmul.f32 %v569_v58, %v978_v35  ;;  %v629_v13 = vsel %vm1066_vm13, %v628_v54, %v624_v7  ;;  %v455_v14 = vadd.f32 %v844_v53, %v454_v8  ;;  %v1103_v35 = vadd.f32 1.0, %v848_v11 }
  0xb6   : > { %v688_v62 = vmul.f32 %v629_v13, %v981_v36  ;;  %v850_v26 = vpop.eup %849  ;;  %v346_v36 = vmul.f32 %v956_v17, %v314_v10  ;;  %v515_v31 = vadd.f32 %v846_v24, %v514_v15  ;;  %v523_v32 = vor.u32 1.1754944e-38, %v522_v5 }
  0xb7   : > { %701 = vst.msk [vmem:[%s1058_s30 + $0x40] sm:$0xff] %vm692_vm4, %v684_v6  ;;  %v459_v30 = vsel %vm458_vm8, %v844_v53, %v455_v14  ;;  %v572_v33 = vmul.f32 %v850_v26, %v1075_v23  ;;  %853 = vrcp.f32 %v1103_v35  ;;  %v350_v34 = vmul.f32 %v956_v17, %v326_v19 }
  0xb8   : > { %705 = vst.msk [vmem:[%s1058_s30 + $0x60] sm:$0xff] %vm692_vm4, %v688_v62  ;;  %v464_v20 = vsel %vm1082_vm2, %v463_v27, %v459_v30  ;;  %v339_v39 = vmul.f32 %v956_v17, %v293_v22  ;;  %v519_v41 = vsel %vm518_vm10, %v846_v24, %v515_v31  ;;  %v580_v43 = vand.u32 2147483647, %v1075_v23  ;;  %v852_v45 = vpop.eup %851 }
  0xb9   : > { %v677_v40 = vmul.f32 %v464_v20, %v984_v37  ;;  %v573_v42 = vsub.f32 1.0, %v572_v33  ;;  %v524_v46 = vsel %vm1108_vm9, %v523_v32, %v519_v41  ;;  %v582_v21 = vand.u32 2147483648, %v1075_v23 }
  0xba   : > { %855 = vpow2.f32 %v796_v29  ;;  %v1131_v47 = vadd.f32 %v961_v18, %v346_v36  ;;  %v681_v37 = vmul.f32 %v524_v46, %v987_v38  ;;  %vm577_vm11 = vweird.f32 %v850_v26 }
  0xbb   : > { %694 = vst.msk [vmem:[%s1058_s30 + $0x8] sm:$0xff] %vm692_vm4, %v677_v40  ;;  %v574_v48 = vmul.f32 %v850_v26, %v573_v42  ;;  %v1136_v49 = vadd.f32 1.0, %v852_v45  ;;  %v1140_v51 = vadd.f32 %v961_v18, %v350_v34  ;;  %v1143_v52 = vadd.f32 %v961_v18, %v339_v39 }
  0xbc   : > { %v800_v50 = vmul.f32 -1.442695, %v1131_v47  ;;  %v343_v53 = vmul.f32 %v956_v17, %v305_v44  ;;  %698 = vst.msk [vmem:[%s1058_s30 + $0x28] sm:$0xff] %vm692_vm4, %v681_v37  ;;  %vm576_vm12 = vweird.f32 %v1075_v23  ;;  %v583_v56 = vor.u32 1.1754944e-38, %v582_v21 }
  0xbd   : > { %v575_v54 = vadd.f32 %v850_v26, %v574_v48  ;;  %857 = vrcp.f32 %v1136_v49  ;;  %v854_v38 = vpop.eup %853  ;;  %vm578_vm13 = vmor %vm576_vm12, %vm577_vm11  ;;  %v804_v57 = vmul.f32 -1.442695, %v1140_v51  ;;  %v793_v59 = vmul.f32 -1.442695, %v1143_v52 }
  0xbe   : > { %859 = vpow2.f32 %v800_v50  ;;  %vm581_vm14 = vcmp.eq.f32.partialorder %v580_v43, 8.507059e+37  ;;  %v632_v60 = vmul.f32 %v854_v38, %v1103_v35  ;;  %v640_v61 = vand.u32 2147483647, %v1103_v35 }
  0xbf   : > { %v579_v24 = vsel %vm578_vm13, %v850_v26, %v575_v54  ;;  %v642_v1 = vand.u32 2147483648, %v1103_v35  ;;  %861 = vpow2.f32 %v804_v57  ;;  %v1156_v2 = vadd.f32 %v961_v18, %v343_v53 }
  0xc0   : > { %v856_v0 = vpop.eup %855  ;;  %v584_v23 = vsel %vm581_vm14, %v583_v56, %v579_v24  ;;  %v633_v4 = vsub.f32 1.0, %v632_v60  ;;  %863 = vpow2.f32 %v793_v59  ;;  %v351_v7 = vmul.f32 %v956_v17, %v329_v63 }
  0xc1   : > { %v685_v58 = vmul.f32 %v584_v23, %v999_v55  ;;  %v1159_v5 = vadd.f32 1.0, %v856_v0  ;;  %v797_v6 = vmul.f32 -1.442695, %v1156_v2  ;;  %vm637_vm15 = vweird.f32 %v854_v38 }
  0xc2   : > { %v634_v9 = vmul.f32 %v854_v38, %v633_v4  ;;  %v347_v10 = vmul.f32 %v956_v17, %v317_v3  ;;  %vm636_vm0 = vweird.f32 %v1103_v35  ;;  %vm1168_vm1 = vcmp.eq.f32.partialorder %v640_v61, 8.507059e+37 }
  0xc3   : > { %v858_v8 = vpop.eup %857  ;;  %702 = vst.msk [vmem:[%s1058_s30 + $0x48] sm:$0xff] %vm692_vm4, %v685_v58  ;;  %865 = vrcp.f32 %v1159_v5  ;;  %v643_v14 = vor.u32 1.1754944e-38, %v642_v1  ;;  %vm471_vm2 = vweird.f32 %v1136_v49  ;;  %vm638_vm3 = vmor %vm636_vm0, %vm637_vm15  ;;  %v475_v17 = vand.u32 2147483647, %v1136_v49 }
  0xc4   : > { %v860_v11 = vpop.eup %859  ;;  %v467_v13 = vmul.f32 %v858_v8, %v1136_v49  ;;  %v635_v62 = vadd.f32 %v854_v38, %v634_v9  ;;  %867 = vpow2.f32 %v797_v6  ;;  %v1178_v35 = vadd.f32 %v961_v18, %v351_v7 }
  0xc5   : > { %v1174_v15 = vadd.f32 1.0, %v860_v11  ;;  %v862_v19 = vpop.eup %861  ;;  %v477_v28 = vand.u32 2147483648, %v1136_v49  ;;  %v1183_v29 = vadd.f32 %v961_v18, %v347_v10  ;;  %vm472_vm5 = vweird.f32 %v858_v8 }
  0xc6   : > { %v468_v22 = vsub.f32 1.0, %v467_v13  ;;  %v864_v26 = vpop.eup %863  ;;  %v639_v27 = vsel %vm638_vm3, %v854_v38, %v635_v62  ;;  %v1187_v31 = vadd.f32 1.0, %v862_v19  ;;  %vm476_vm6 = vcmp.eq.f32.partialorder %v475_v17, 8.507059e+37  ;;  %vm473_vm7 = vmor %vm471_vm2, %vm472_vm5 }
  0xc7   : > { %869 = vrcp.f32 %v1174_v15  ;;  %v644_v36 = vsel %vm1168_vm1, %v643_v14, %v639_v27  ;;  %v1190_v20 = vadd.f32 1.0, %v864_v26  ;;  %v478_v18 = vor.u32 1.1754944e-38, %v477_v28 }
  0xc8   : > { %v469_v30 = vmul.f32 %v858_v8, %v468_v22  ;;  %v689_v33 = vmul.f32 %v644_v36, %v1023_v12  ;;  %v535_v40 = vand.u32 2147483647, %v1159_v5  ;;  %871 = vrcp.f32 %v1187_v31 }
  0xc9   : > { %v866_v32 = vpop.eup %865  ;;  %v801_v41 = vmul.f32 -1.442695, %v1183_v29  ;;  %v537_v44 = vand.u32 2147483648, %v1159_v5  ;;  %873 = vrcp.f32 %v1190_v20  ;;  %vm531_vm8 = vweird.f32 %v1159_v5 }
  0xca   : > { %v470_v34 = vadd.f32 %v858_v8, %v469_v30  ;;  %v527_v39 = vmul.f32 %v866_v32, %v1159_v5  ;;  %706 = vst.msk [vmem:[%s1058_s30 + $0x68] sm:$0xff] %vm692_vm4, %v689_v33  ;;  %v868_v42 = vpop.eup %867  ;;  %v595_v21 = vand.u32 2147483647, %v1174_v15  ;;  %v597_v37 = vand.u32 2147483648, %v1174_v15 }
  0xcb   : > { %vm532_vm9 = vweird.f32 %v866_v32  ;;  %vm1207_vm10 = vcmp.eq.f32.partialorder %v535_v40, 8.507059e+37  ;;  %v1211_v54 = vadd.f32 1.0, %v868_v42  ;;  %875 = vpow2.f32 %v801_v41 }
  0xcc   : > { %v474_v12 = vsel %vm473_vm7, %v858_v8, %v470_v34  ;;  %v528_v43 = vsub.f32 1.0, %v527_v39  ;;  %v538_v56 = vor.u32 1.1754944e-38, %v537_v44  ;;  %vm591_vm11 = vweird.f32 %v1174_v15  ;;  %vm533_vm12 = vmor %vm531_vm8, %vm532_vm9 }
  0xcd   : > { %v870_v45 = vpop.eup %869  ;;  %v479_v46 = vsel %vm476_vm6, %v478_v18, %v474_v12  ;;  %vm1218_vm13 = vcmp.eq.f32.partialorder %v595_v21, 8.507059e+37  ;;  %v598_v24 = vor.u32 1.1754944e-38, %v597_v37  ;;  %877 = vrcp.f32 %v1211_v54 }
  0xce   : > { %v678_v48 = vmul.f32 %v479_v46, %v1028_v16  ;;  %v529_v49 = vmul.f32 %v866_v32, %v528_v43  ;;  %v587_v50 = vmul.f32 %v870_v45, %v1174_v15  ;;  %v872_v59 = vpop.eup %871  ;;  %v805_v60 = vmul.f32 -1.442695, %v1178_v35 }
  0xcf   : > { %v874_v61 = vpop.eup %873  ;;  %vm592_vm14 = vweird.f32 %v870_v45  ;;  %v647_v23 = vmul.f32 %v872_v59, %v1187_v31  ;;  %vm651_vm15 = vweird.f32 %v1187_v31  ;;  %v655_v3 = vand.u32 2147483647, %v1187_v31 }
  0xd0   : > { %695 = vst.msk [vmem:[%s1058_s30 + $0x10] sm:$0xff] %vm692_vm4, %v678_v48  ;;  %v530_v38 = vadd.f32 %v866_v32, %v529_v49  ;;  %v588_v57 = vsub.f32 1.0, %v587_v50  ;;  %v482_v58 = vmul.f32 %v874_v61, %v1190_v20  ;;  %v657_v7 = vand.u32 2147483648, %v1187_v31  ;;  %vm593_vm0 = vmor %vm591_vm11, %vm592_vm14 }
  0xd1   : > { %v648_v6 = vsub.f32 1.0, %v647_v23  ;;  %v876_v8 = vpop.eup %875  ;;  %v490_v10 = vand.u32 2147483647, %v1190_v20  ;;  %v492_v11 = vand.u32 2147483648, %v1190_v20  ;;  %879 = vpow2.f32 %v805_v60 }
  0xd2   : > { %v534_v63 = vsel %vm533_vm12, %v866_v32, %v530_v38  ;;  %v589_v0 = vmul.f32 %v870_v45, %v588_v57  ;;  %v483_v9 = vsub.f32 1.0, %v482_v58  ;;  %vm652_vm1 = vweird.f32 %v872_v59 }
  0xd3   : > { %v539_v1 = vsel %vm1207_vm10, %v538_v56, %v534_v63  ;;  %v649_v13 = vmul.f32 %v872_v59, %v648_v6  ;;  %v878_v62 = vpop.eup %877  ;;  %vm486_vm2 = vweird.f32 %v1190_v20  ;;  %vm487_vm3 = vweird.f32 %v874_v61  ;;  %vm653_vm6 = vmor %vm651_vm15, %vm652_vm1 }
  0xd4   : > { %v682_v4 = vmul.f32 %v539_v1, %v1035_v25  ;;  %v590_v5 = vadd.f32 %v870_v45, %v589_v0  ;;  %v431_v25 = vadd.f32 1.0, %v876_v8  ;;  %v484_v19 = vmul.f32 %v874_v61, %v483_v9  ;;  %vm488_vm8 = vmor %vm486_vm2, %vm487_vm3 }
  0xd5   : > { %v650_v22 = vadd.f32 %v872_v59, %v649_v13  ;;  %vm656_vm5 = vcmp.eq.f32.partialorder %v655_v3, 8.507059e+37  ;;  %v542_v17 = vmul.f32 %v878_v62, %v1211_v54  ;;  %v658_v26 = vor.u32 1.1754944e-38, %v657_v7 }
  0xd6   : > { %699 = vst.msk [vmem:[%s1058_s30 + $0x30] sm:$0xff] %vm692_vm4, %v682_v4  ;;  %v594_v55 = vsel %vm593_vm0, %v870_v45, %v590_v5  ;;  %v485_v27 = vadd.f32 %v874_v61, %v484_v19  ;;  %vm491_vm7 = vcmp.eq.f32.partialorder %v490_v10, 8.507059e+37  ;;  %881 = vrcp.f32 %v431_v25 }
  0xd7   : > { %v599_v14 = vsel %vm1218_vm13, %v598_v24, %v594_v55  ;;  %v654_v28 = vsel %vm653_vm6, %v872_v59, %v650_v22  ;;  %v493_v36 = vor.u32 1.1754944e-38, %v492_v11  ;;  %v543_v30 = vsub.f32 1.0, %v542_v17 }
  0xd8   : > { %v686_v15 = vmul.f32 %v599_v14, %v1131_v47  ;;  %vm546_vm9 = vweird.f32 %v1211_v54  ;;  %v880_v47 = vpop.eup %879  ;;  %v659_v32 = vsel %vm656_vm5, %v658_v26, %v654_v28  ;;  %v489_v33 = vsel %vm488_vm8, %v874_v61, %v485_v27 }
  0xd9   : > { %v550_v31 = vand.u32 2147483647, %v1211_v54  ;;  %v552_v20 = vand.u32 2147483648, %v1211_v54  ;;  %v690_v34 = vmul.f32 %v659_v32, %v1140_v51  ;;  %v494_v39 = vsel %vm491_vm7, %v493_v36, %v489_v33 }
  0xda   : > { %703 = vst.msk [vmem:[%s1058_s30 + $0x50] sm:$0xff] %vm692_vm4, %v686_v15  ;;  %v544_v18 = vmul.f32 %v878_v62, %v543_v30  ;;  %vm547_vm10 = vweird.f32 %v878_v62  ;;  %v679_v40 = vmul.f32 %v494_v39, %v1143_v52  ;;  %v435_v41 = vadd.f32 1.0, %v880_v47 }
  0xdb   : > { %707 = vst.msk [vmem:[%s1058_s30 + $0x70] sm:$0xff] %vm692_vm4, %v690_v34  ;;  %vm548_vm11 = vmor %vm546_vm9, %vm547_vm10  ;;  %v553_v43 = vor.u32 1.1754944e-38, %v552_v20  ;;  %vm551_vm12 = vcmp.eq.f32.partialorder %v550_v31, 8.507059e+37  ;;  %v612_v21 = vand.u32 2147483648, %v431_v25  ;;  %v610_v48 = vand.u32 2147483647, %v431_v25 }
  0xdc   : > { %v545_v42 = vadd.f32 %v878_v62, %v544_v18  ;;  %v882_v12 = vpop.eup %881  ;;  %696 = vst.msk [vmem:[%s1058_s30 + $0x18] sm:$0xff] %vm692_vm4, %v679_v40  ;;  %883 = vrcp.f32 %v435_v41  ;;  %vm606_vm14 = vweird.f32 %v431_v25  ;;  %v670_v24 = vand.u32 2147483647, %v435_v41 }
  0xdd   : > { %v602_v51 = vmul.f32 %v882_v12, %v431_v25  ;;  %vm607_vm13 = vweird.f32 %v882_v12  ;;  %v613_v54 = vor.u32 1.1754944e-38, %v612_v21  ;;  %vm611_vm0 = vcmp.eq.f32.partialorder %v610_v48, 8.507059e+37 }
  0xde   : > { %v549_v44 = vsel %vm548_vm11, %v878_v62, %v545_v42  ;;  %vm608_vm15 = vmor %vm606_vm14, %vm607_vm13  ;;  %vm666_vm2 = vweird.f32 %v435_v41  ;;  %vm671_vm5 = vcmp.eq.f32.partialorder %v670_v24, 8.507059e+37 }
  0xdf   : > { %v554_v45 = vsel %vm551_vm12, %v553_v43, %v549_v44  ;;  %v603_v52 = vsub.f32 1.0, %v602_v51 }
  0xe0   : > { %v683_v46 = vmul.f32 %v554_v45, %v1156_v2  ;;  %v672_v2 = vand.u32 2147483648, %v435_v41 }
  0xe1   : > { %v604_v37 = vmul.f32 %v882_v12, %v603_v52 }
  0xe2   : > { %700 = vst.msk [vmem:[%s1058_s30 + $0x38] sm:$0xff] %vm692_vm4, %v683_v46  ;;  %v884_v49 = vpop.eup %883  ;;  %v673_v61 = vor.u32 1.1754944e-38, %v672_v2 }
  0xe3   : > { %v605_v50 = vadd.f32 %v882_v12, %v604_v37  ;;  %v662_v53 = vmul.f32 %v884_v49, %v435_v41  ;;  %vm667_vm1 = vweird.f32 %v884_v49 }
  0xe4   : > { %vm668_vm3 = vmor %vm666_vm2, %vm667_vm1 }
  0xe5   : > { %v609_v38 = vsel %vm608_vm15, %v882_v12, %v605_v50  ;;  %v663_v56 = vsub.f32 1.0, %v662_v53 }
  0xe6   : > { %v614_v57 = vsel %vm611_vm0, %v613_v54, %v609_v38 }
  0xe7   : > { %v687_v59 = vmul.f32 %v614_v57, %v1183_v29  ;;  %v664_v16 = vmul.f32 %v884_v49, %v663_v56 }
  0xe9   : > { %704 = vst.msk [vmem:[%s1058_s30 + $0x58] sm:$0xff] %vm692_vm4, %v687_v59  ;;  %v665_v60 = vadd.f32 %v884_v49, %v664_v16 }
  0xeb   : > { %v669_v63 = vsel %vm668_vm3, %v884_v49, %v665_v60 }
  0xec   : > { %v674_v0 = vsel %vm671_vm5, %v673_v61, %v669_v63 }
  0xed   : > { %v691_v23 = vmul.f32 %v674_v0, %v1178_v35 }
  0xef   : > { %708 = vst.msk [vmem:[%s1058_s30 + $0x78] sm:$0xff] %vm692_vm4, %v691_v23 }
  0xf0 PF: > { %s14_s15 = sadd.s32 1, %s891_s15  }
  0xf1   : > { %p11_p4 = scmp.ge.s32.totalorder %s14_s15, 6  }
  0xf3   :  { %13 = sbr.rel (!%p11_p4) target bundleno = 1 (0x1), region = 66 }

</bundles_post_ra>
